<compile_context>
chip_gen: v7x
topology: tpu7x:2x2x1
jax: 0.10.0
libtpu: 0.0.40
codegen_flags: <defaults>
</compile_context>

<pallas_src>
from functools import partial

import jax
import jax.numpy as jnp
from jax.experimental import pallas as pl
from jax.experimental.pallas import tpu as pltpu

C_PAD = 128        # lane-dense padded class dimension (weights/bias columns)
NEG = -1e30        # large negative finite (not -inf) so logits - m never yields NaN
TB_MAX = 2048      # max batch-tile rows


def _round_up(n, m):
    return ((n + m - 1) // m) * m


def _tiles(B):
    """nt = cdiv(B, TB_MAX) first, then tb = round_up(cdiv(B, nt), 8)."""
    nt = pl.cdiv(B, TB_MAX)
    tb = _round_up(pl.cdiv(B, nt), 8)
    nt = pl.cdiv(B, tb)            # actual (possibly ragged) grid size
    return tb, nt


# ---------------------------------------------------------------------------
# Kernels
# ---------------------------------------------------------------------------
def _classify_test_kernel(num_classes, x_ref, w_ref, b_ref, probs_ref):
    """probs = softmax(x @ W + b)[:, :num_classes]; b carries -1e30 in padded lanes.

    Garbage rows of a ragged last tile are never written back (masked store against
    the (B, num_classes) output array), so no row mask is needed here.
    """
    logits = jnp.dot(x_ref[...], w_ref[...], preferred_element_type=jnp.float32)
    logits = logits + b_ref[...]                       # padded lanes -> -1e30
    m = jnp.max(logits, axis=-1, keepdims=True)
    e = jnp.exp(logits - m)                            # padded lanes underflow to 0
    s = jnp.sum(e, axis=-1, keepdims=True)
    inv = pl.reciprocal(s, approx=True)
    probs_ref[...] = e[:, :num_classes] * inv          # lane-masked store, real classes only


def _classify_train_kernel(num_classes, n_rows, sign_ref, x_ref, w_ref, b_ref,
                           labels_ref, probs_ref, loss_ref):
    """y = sign*(x@W + b), pad lanes forced to -1e30 AFTER the sign multiply.
    probs = softmax(y)[:, :num_classes]; per-tile CE partial sum (rows >= n_rows masked)."""
    sign = sign_ref[0, 0]
    logits = jnp.dot(x_ref[...], w_ref[...], preferred_element_type=jnp.float32)
    logits = sign * (logits + b_ref[...])
    tb, c_pad = logits.shape
    col = jax.lax.broadcasted_iota(jnp.int32, (tb, c_pad), 1)
    logits = jnp.where(col < num_classes, logits, NEG)  # mask after sign multiply

    m = jnp.max(logits, axis=-1, keepdims=True)
    shifted = logits - m
    e = jnp.exp(shifted)
    s = jnp.sum(e, axis=-1, keepdims=True)
    inv = pl.reciprocal(s, approx=True)
    probs_ref[...] = e[:, :num_classes] * inv           # lane-masked store, real classes

    # Cross entropy, partial sum for this batch tile (exact log path).
    log_probs = shifted - jnp.log(s)
    onehot = (col == labels_ref[...]).astype(jnp.float32)          # labels: (tb, 1)
    row_nll = -jnp.sum(log_probs * onehot, axis=-1, keepdims=True)  # (tb, 1)
    # Ragged last tile: rows >= n_rows hold garbage x/labels (possibly NaN) -> select 0.
    row_id = pl.program_id(0) * tb + jax.lax.broadcasted_iota(jnp.int32, (tb, 1), 0)
    row_nll = jnp.where(row_id < n_rows, row_nll, 0.0)
    loss_ref[...] = jnp.full(loss_ref.shape, jnp.sum(row_nll), dtype=jnp.float32)


# ---------------------------------------------------------------------------
# Jitted wrappers (pad-free, fused loss mean)
# ---------------------------------------------------------------------------
@partial(jax.jit, static_argnames=("num_classes",))
def _classifier_test_impl(x, w, b_masked, *, num_classes):
    B, F = x.shape
    tb, nt = _tiles(B)
    return pl.pallas_call(
        partial(_classify_test_kernel, num_classes),
        out_shape=jax.ShapeDtypeStruct((B, num_classes), jnp.float32),
        grid=(nt,),
        in_specs=[pl.BlockSpec((tb, F), lambda i: (i, 0)),        # x tile (ragged ok)
                  pl.BlockSpec((F, C_PAD), lambda i: (0, 0)),     # W (replicated)
                  pl.BlockSpec((1, C_PAD), lambda i: (0, 0))],    # b_masked (replicated)
        out_specs=pl.BlockSpec((tb, num_classes), lambda i: (i, 0)),
        compiler_params=pltpu.CompilerParams(
            dimension_semantics=("parallel",)),
    )(x, w, b_masked)


@partial(jax.jit, static_argnames=("num_classes",))
def _classifier_train_impl(x, labels, sign, w, b, *, num_classes):
    B, F = x.shape
    tb, nt = _tiles(B)
    probs, loss_parts = pl.pallas_call(
        partial(_classify_train_kernel, num_classes, B),
        out_shape=(jax.ShapeDtypeStruct((B, num_classes), jnp.float32),
                   jax.ShapeDtypeStruct((nt, 1, 128), jnp.float32)),
        grid=(nt,),
        in_specs=[pl.BlockSpec(memory_space=pltpu.MemorySpace.SMEM),  # sign scalar (1,1)
                  pl.BlockSpec((tb, F), lambda i: (i, 0)),            # x tile
                  pl.BlockSpec((F, C_PAD), lambda i: (0, 0)),         # W
                  pl.BlockSpec((1, C_PAD), lambda i: (0, 0)),         # b (unmasked)
                  pl.BlockSpec((tb, 1), lambda i: (i, 0))],           # labels
        out_specs=(pl.BlockSpec((tb, num_classes), lambda i: (i, 0)),
                   pl.BlockSpec((1, 1, 128), lambda i: (i, 0, 0))),
        compiler_params=pltpu.CompilerParams(
            dimension_semantics=("parallel",)),
    )(sign, x, w, b, labels)
    loss = jnp.sum(loss_parts[:, 0, 0]) / B            # mean reduction over real rows
    return loss, probs


# ---------------------------------------------------------------------------
# Module wrapper
# ---------------------------------------------------------------------------
class Classifier:
    def __init__(self, nz, nc, num_classes, ndf, ngpu, *, key):
        self.ngpu = ngpu
        self.nc = nc
        self.isize = nz
        self.num_classes = num_classes
        in_features = nc * nz
        self.in_features = in_features

        # nn.Linear default init: U(-1/sqrt(in), 1/sqrt(in)); deterministic via key.
        bound = 1.0 / (in_features ** 0.5)
        kw, kb = jax.random.split(key)
        w = jax.random.uniform(kw, (in_features, num_classes), jnp.float32, -bound, bound)
        b = jax.random.uniform(kb, (1, num_classes), jnp.float32, -bound, bound)

        # Lane-dense padding of the class dim to 128 (zero weight/bias columns).
        self.w = jnp.zeros((in_features, C_PAD), jnp.float32).at[:, :num_classes].set(w)
        self.b = jnp.zeros((1, C_PAD), jnp.float32).at[:, :num_classes].set(b)
        # Precomputed once: bias with -1e30 in padded lanes (test path, no per-call add).
        pad_mask = jnp.full((1, C_PAD), NEG, jnp.float32).at[:, :num_classes].set(0.0)
        self.b_masked = self.b + pad_mask

    # --- inference path -------------------------------------------------------
    def classifier_test(self, x):
        return _classifier_test_impl(x, self.w, self.b_masked,
                                     num_classes=self.num_classes)

    # --- training path --------------------------------------------------------
    def classifier(self, x, gt_labels, realfake_sign):
        labels = jnp.asarray(gt_labels, jnp.int32).reshape(-1, 1)
        sign = jnp.asarray(realfake_sign, jnp.float32).reshape(1, 1)
        return _classifier_train_impl(x, labels, sign, self.w, self.b,
                                      num_classes=self.num_classes)

    def forward(self, x, gt_labels=None, realfake_sign=None):
        # TODO(synk): ngpu/data_parallel branch has no single-kernel TPU analogue;
        # single-core path only.
        if gt_labels is None:
            return self.classifier_test(x)
        return self.classifier(x, gt_labels, realfake_sign)

    __call__ = forward


# ---------------------------------------------------------------------------
# Pure-JAX reference for correctness checks
# ---------------------------------------------------------------------------
def _ref_test(x, w, b):
    return jax.nn.softmax(x @ w + b, axis=1)


def _ref_train(x, w, b, labels, sign):
    y = sign * (x @ w + b)
    logp = jax.nn.log_softmax(y, axis=1)
    loss = -jnp.mean(logp[jnp.arange(x.shape[0]), labels])
    return loss, jax.nn.softmax(y, axis=1)


if __name__ == "__main__":
    # Small shapes consistent with the module: nc=1, nz=32 -> in_features=32,
    # num_classes=21, batch=8.
    nz, nc, num_classes, ndf, ngpu = 32, 1, 21, 100, 1
    B = 8

    key = jax.random.PRNGKey(0)
    k_model, k_x, k_lbl = jax.random.split(key, 3)

    model = Classifier(nz, nc, num_classes, ndf, ngpu, key=k_model)

    x = jax.random.normal(k_x, (B, nc * nz), jnp.float32)
    gt_labels = jax.random.randint(k_lbl, (B,), 0, num_classes, jnp.int32)
    realfake_sign = -1.0

    # Test path: softmax(Linear(x))
    probs_test = jax.block_until_ready(model(x))

    # Train path: (CE loss, softmax(sign * Linear(x)))
    loss, probs_train = model(x, gt_labels, realfake_sign)
    loss = jax.block_until_ready(loss)
    probs_train = jax.block_until_ready(probs_train)

    # Verify against a pure-JAX reference (using the unpadded weights).
    w_real = model.w[:, :num_classes]
    b_real = model.b[:, :num_classes]
    ref_probs_test = _ref_test(x, w_real, b_real)
    ref_loss, ref_probs_train = _ref_train(x, w_real, b_real, gt_labels, realfake_sign)

    assert probs_test.shape == (B, num_classes)
    assert probs_train.shape == (B, num_classes)
    # probs use the EUP approximate reciprocal -> allow ~1e-3 absolute slack;
    # the loss path uses exact log, so keep it tight.
    assert jnp.allclose(probs_test, ref_probs_test, atol=1e-3, rtol=1e-3)
    assert jnp.allclose(probs_train, ref_probs_train, atol=1e-3, rtol=1e-3)
    assert jnp.allclose(loss, ref_loss, atol=1e-4, rtol=1e-4)

    print("KERNEL_OK")
</pallas_src>

<mosaic_0001>
module attributes {stable_mosaic.version = 11 : i64} {
  func.func @_classify_test_kernel(%arg0: i32, %arg1: memref<8x32xf32, #tpu.memory_space<vmem>>, %arg2: memref<32x128xf32, #tpu.memory_space<vmem>>, %arg3: memref<1x128xf32, #tpu.memory_space<vmem>>, %arg4: memref<8x21xf32, #tpu.memory_space<vmem>>) attributes {dimension_semantics = [#tpu.dimension_semantics<parallel>], iteration_bounds = array<i64: 1>, scalar_prefetch = 0 : i64, scratch_operands = 0 : i64, tpu.core_type = #tpu.core_type<tc>, window_params = [{transform_indices = @transform_0, window_bounds = array<i64: 8, 32>}, {pipeline_mode = #tpu.pipeline_mode<synchronous>, transform_indices = @transform_1, window_bounds = array<i64: 32, 128>}, {pipeline_mode = #tpu.pipeline_mode<synchronous>, transform_indices = @transform_2, window_bounds = array<i64: 1, 128>}, {transform_indices = @transform_3, window_bounds = array<i64: 8, 21>}]} {
    %c0 = arith.constant 0 : index
    %c0_0 = arith.constant 0 : index
    %0 = vector.load %arg1[%c0, %c0_0] : memref<8x32xf32, #tpu.memory_space<vmem>>, vector<8x32xf32>
    %c0_1 = arith.constant 0 : index
    %c0_2 = arith.constant 0 : index
    %1 = vector.load %arg2[%c0_1, %c0_2] : memref<32x128xf32, #tpu.memory_space<vmem>>, vector<32x128xf32>
    %cst = arith.constant dense<0.000000e+00> : vector<8x128xf32>
    %2 = tpu.matmul %0, %1, %cst {dimension_numbers = #tpu.dot_dimension_numbers<[1], [0], [0], [1], [0, 0, 1, 1], [], []>} : vector<8x32xf32>, vector<32x128xf32>, vector<8x128xf32> -> vector<8x128xf32>
    %c0_3 = arith.constant 0 : index
    %c0_4 = arith.constant 0 : index
    %3 = vector.load %arg3[%c0_3, %c0_4] : memref<1x128xf32, #tpu.memory_space<vmem>>, vector<1x128xf32>
    %4 = vector.broadcast %3 : vector<1x128xf32> to vector<8x128xf32>
    %5 = arith.addf %2, %4 : vector<8x128xf32>
    %cst_5 = arith.constant dense<0xFF800000> : vector<8xf32>
    %6 = vector.multi_reduction <maximumf>, %5, %cst_5 [1] : vector<8x128xf32> to vector<8xf32>
    %7 = vector.shape_cast %6 : vector<8xf32> to vector<8x1xf32>
    %8 = vector.broadcast %7 : vector<8x1xf32> to vector<8x128xf32>
    %9 = arith.subf %5, %8 : vector<8x128xf32>
    %10 = math.exp %9 : vector<8x128xf32>
    %cst_6 = arith.constant dense<0.000000e+00> : vector<8xf32>
    %11 = vector.multi_reduction <add>, %10, %cst_6 [1] : vector<8x128xf32> to vector<8xf32>
    %12 = vector.shape_cast %11 : vector<8xf32> to vector<8x1xf32>
    %13 = tpu.reciprocal %12 {approx = true} : vector<8x1xf32> -> vector<8x1xf32>
    %14 = vector.extract_strided_slice %10 {offsets = [0, 0], sizes = [8, 21], strides = [1, 1]} : vector<8x128xf32> to vector<8x21xf32>
    %15 = vector.broadcast %13 : vector<8x1xf32> to vector<8x21xf32>
    %16 = arith.mulf %14, %15 : vector<8x21xf32>
    %c0_7 = arith.constant 0 : index
    %c0_8 = arith.constant 0 : index
    %17 = vector.load %arg4[%c0_7, %c0_8] : memref<8x21xf32, #tpu.memory_space<vmem>>, vector<8x21xf32>
    tpu.vector_store %arg4[%c0_7, %c0_8], %16 {strides = array<i32>} : memref<8x21xf32, #tpu.memory_space<vmem>>, vector<8x21xf32>,
    return
  }
  func.func @transform_0(%arg0: i32) -> (i32, i32) {
    %c0_i32 = arith.constant 0 : i32
    %c0_i32_0 = arith.constant 0 : i32
    return %arg0, %c0_i32 : i32, i32
  }
  func.func @transform_1(%arg0: i32) -> (i32, i32) {
    %c0_i32 = arith.constant 0 : i32
    %c0_i32_0 = arith.constant 0 : i32
    %c0_i32_1 = arith.constant 0 : i32
    return %c0_i32, %c0_i32_0 : i32, i32
  }
  func.func @transform_2(%arg0: i32) -> (i32, i32) {
    %c0_i32 = arith.constant 0 : i32
    %c0_i32_0 = arith.constant 0 : i32
    %c0_i32_1 = arith.constant 0 : i32
    return %c0_i32, %c0_i32_0 : i32, i32
  }
  func.func @transform_3(%arg0: i32) -> (i32, i32) {
    %c0_i32 = arith.constant 0 : i32
    %c0_i32_0 = arith.constant 0 : i32
    return %arg0, %c0_i32 : i32, i32
  }
}

</mosaic_0001>

<bundles_post_ra>
// kernel: _classifier_test_impl.1
= control target key start
LH: loop header
LB: loop body
LE: loop exit
PB: predicated region body
PF: predicated region fallthrough
CT: control target
= control target key end

     0   :  { %8 = vsyncpa [#allocation3], 0  ;;  %s336_s0 = inlined_call_operand.hbm [shape: f32[8,32], index: 0, kind: input, shape index: {}]   ;;  %s337_s1 = inlined_call_operand.hbm [shape: f32[32,128], index: 1, kind: input, shape index: {}]   ;;  %s338_s2 = inlined_call_operand.vmem [shape: f32[1,128], index: 2, kind: input, shape index: {}]   ;;  %s339_s3 = inlined_call_operand.hbm [shape: f32[8,21], index: 3, kind: output, shape index: {}]  }
   0x1   :  { %9 = vsyncpa [#allocation6], 0 }
   0x2   :  { %10 = vsyncpa [#allocation4], 0  ;;  %s262_s12 = smov [#allocation2]   ;;  %s263_s14 = smov [#allocation5]  }
   0x3   :  { %s17_s13 = sshll.u32 %s262_s12, 4  ;;  %s26_s15 = sshll.u32 %s263_s14, 4  ;;  %s18_s13 = int_to_ptr.vmem [resolvable:$true] %s17_s13  ;;  %s290_s15 = int_to_ptr.vmem [resolvable:$true] %s26_s15 }
   0x4   :  { %s190_s18 = scalar_lea.hbm %s336_s0, 128 }
   0x5   :  { %p191_p0 = scmp.ne.s32.totalorder %s336_s0, %s190_s18  ;;  %p194_p1 = scmp.lt.u32.totalorder %s190_s18, %s336_s0 }
   0x7   :  { %p196_p2 = pnand %p194_p1, %p191_p0 }
   0x9   :  { %199 = shalt.err (!%p196_p2)
}
   0xa   :  { %s200_s23 = scalar_lea.vmem %s18_s13, 128  ;;  %p205_p4 = scmp.lt.s32.totalorder %s18_s13, %s18_s13 }
   0xb   :  { %p201_p3 = scmp.ne.s32.totalorder %s18_s13, %s200_s23  ;;  %p206_p5 = scmp.lt.s32.totalorder %s200_s23, %s200_s23 }
   0xd   :  { %p207_p6 = por %p206_p5, %p205_p4 }
   0xf   :  { %p208_p7 = pnand %p207_p6, %p201_p3 }
  0x11   :  { %211 = shalt.err (!%p208_p7)
}
  0x12   :  { %20 = dma.hbm_to_vmem [thread:$0]  %s336_s0, 128, %s18_s13, [#allocation3]  }
  0x13   :  { %s212_s28 = scalar_lea.hbm %s337_s1, 512 }
  0x14   :  { %p213_p8 = scmp.ne.s32.totalorder %s337_s1, %s212_s28  ;;  %p216_p9 = scmp.lt.u32.totalorder %s212_s28, %s337_s1 }
  0x16   :  { %p218_p10 = pnand %p216_p9, %p213_p8 }
  0x18   :  { %221 = shalt.err (!%p218_p10)
}
  0x19   :  { %s222_s6 = scalar_lea.vmem %s290_s15, 512  ;;  %p227_p12 = scmp.lt.s32.totalorder %s290_s15, %s290_s15 }
  0x1a   :  { %p223_p11 = scmp.ne.s32.totalorder %s290_s15, %s222_s6  ;;  %p228_p13 = scmp.lt.s32.totalorder %s222_s6, %s222_s6 }
  0x1c   :  { %p229_p0 = por %p228_p13, %p227_p12 }
  0x1e   :  { %p230_p1 = pnand %p229_p0, %p223_p11 }
  0x20   :  { %233 = shalt.err (!%p230_p1)
}
  0x21   :  { %s264_s0 = smov 128   ;;  %s265_s7 = smov 8  }
  0x22   :  { %32 = dma.hbm_to_vmem [thread:$0]  %s337_s1, 512, %s290_s15, [#allocation6], %s264_s0, %s264_s0, %s265_s7  }
  0x23   :  { %256 = dma.done.wait [#allocation3], 128  }
  0x24   :  { %257 = vsyncadd [#allocation3], 4294967168 }
  0x25   :  { %258 = dma.done.wait [#allocation6], 512  }
  0x26   :  { %259 = vsyncadd [#allocation6], 4294966784  ;;  %v266_v0 = vmov 0.0|0.0   ;;  %vm267_vm0 = vmmov 0   ;;  %v268_v1 = vmov 0.0   ;;  %v42_v2 = vld [vmem:[#allocation5] sm:$0xff] }
  0x27   :  { %172 = vmatprep.subr.bf16.mxu0 %v266_v0  ;;  %169 = vmatprep.mubr.msk.f32.mxu0 %vm267_vm0, %v268_v1  ;;  %v43_v3 = vld [vmem:[#allocation5 + $0x8] sm:$0xff]  ;;  %v44_v4 = vld [vmem:[#allocation5 + $0x10] sm:$0xff]  ;;  %v45_v6 = vld [vmem:[#allocation5 + $0x18] sm:$0xff]  ;;  %vm53_vm1 = vcmask 261120   ;;  %s269_s11 = smov [#allocation7]   ;;  %vm136_vm2 = vcmask 171008  }
  0x28   :  { %v173_v5 = vpack.c.bf16 %v43_v3, %v42_v2  ;;  %v176_v7 = vpack.c.bf16 %v45_v6, %v44_v4  ;;  %v41_v8 = vld [vmem:[#allocation2] sm:$0xff]  ;;  %s144_s12 = sshll.u32 %s269_s11, 4  ;;  %s145_s12 = int_to_ptr.vmem [resolvable:$true] %s144_s12 }
  0x29   :  { %v154_v9 = vld [vmem:[%s338_s2] ss:$0 sm:$0xff]  ;;  %s234_s2 = scalar_lea.vmem %s145_s12, 128  ;;  %p239_p3 = scmp.lt.s32.totalorder %s145_s12, %s145_s12 }
  0x2a   :  { %174 = vmatpush3.bf16.msra.mxu0 %v173_v5  ;;  %p235_p2 = scmp.ne.s32.totalorder %s145_s12, %s234_s2  ;;  %p240_p4 = scmp.lt.s32.totalorder %s234_s2, %s234_s2 }
  0x2b   :  { %175 = vmatprep.subr.bf16.mxu0 %v266_v0 }
  0x2c   :  { %p241_p5 = por %p240_p4, %p239_p3 }
  0x2e   :  { %177 = vmatpush3.bf16.msra.mxu0 %v176_v7  ;;  %p242_p6 = pnand %p241_p5, %p235_p2 }
  0x31   :  { %170 = vmatmul.mubr.msk.f32.vlgmr.msra.gmra.mrb[0].mxu0 %vm53_vm1, %v41_v8 }
 0x104   :  { %v123_v10 = vpop.f32.mrb[0].mxu0 }
 0x105   :  { %v124_v11 = vadd.f32 %v154_v9, %v123_v10  ;;  %v171_v12 = vpop.f32.mrb[1].mxu0 }
 0x107   :  { %127 = vmax.xlane.f32.xlu0 %v124_v11 }
 0x194   :  { %v128_v13 = vpop.xlane.xlu0 %127 }
 0x195   :  { %v129_v14 = vsub.f32 %v124_v11, %v128_v13 }
 0x197   :  { %v130_v15 = vmul.f32 1.442695, %v129_v14 }
 0x199   :  { %186 = vpow2.f32 %v130_v15 }
 0x1a3   :  { %v187_v16 = vpop.eup %186 }
 0x1a4   :  { %132 = vadd.xlane.f32.xlu0 %v187_v16 }
 0x231   :  { %v133_v17 = vpop.xlane.xlu0 %132 }
 0x232   :  { %188 = vrcp.f32 %v133_v17 }
 0x23c   :  { %v189_v18 = vpop.eup %188 }
 0x23d   :  { %v135_v19 = vmul.f32 %v189_v18, %v187_v16 }
 0x23f   :  { %137 = vst.msk [vmem:[#allocation7] sm:$0xff] %vm136_vm2, %v135_v19 }
 0x240   :  { %245 = shalt.err (!%p242_p6)
}
 0x241   :  { %s246_s15 = scalar_lea.hbm %s339_s3, 128 }
 0x242   :  { %p247_p7 = scmp.ne.s32.totalorder %s339_s3, %s246_s15  ;;  %p250_p8 = scmp.lt.u32.totalorder %s246_s15, %s339_s3 }
 0x244   :  { %p252_p9 = pnand %p250_p8, %p247_p7 }
 0x246   :  { %255 = shalt.err (!%p252_p9)
}
 0x247   :  { %147 = dma.vmem_to_hbm [thread:$0]  %s145_s12, 128, %s339_s3, [#allocation4]  }
 0x248   :  { %260 = dma.done.wait [#allocation4], 128  }
 0x249   :  { %261 = vsyncadd [#allocation4], 4294967168 }
 0x24a   :  { %151 = vsyncpa [#allocation3], 1 }
 0x24b   :  { %152 = vsyncpa [#allocation6], 1 }
 0x24c   :  { %153 = vsyncpa [#allocation4], 1 }

</bundles_post_ra>
